<compile_context>
chip_gen: v7x
topology: tpu7x:2x2x1
jax: 0.10.0
libtpu: 0.0.40
codegen_flags: <defaults>
</compile_context>

<pallas_src>
import functools

import jax
import jax.numpy as jnp
from jax.experimental import pallas as pl
from jax.experimental.pallas import tpu as pltpu


def _mlp_kernel(x_ref, p_ref, o_ref, *, dims, row_off):
    """4-layer MLP on one (tb, c_in1) feature tile.

    p_ref is the packed parameter slab [R, c_pad]:
      - each weight W_i stored as [fan_in, fan_out] (zero-padded to c_pad lanes,
        segment start row aligned to 8 sublanes)
      - each bias stored as a single [1, fan_out] row (zero-padded to c_pad).
    """
    c_in1, c1, c2, c3, c4, c_pad = dims
    rw1, rb1, rw2, rb2, rw3, rb3, rw4, rb4 = row_off
    wdt = p_ref.dtype  # MXU input dtype (f32 by default, bf16 optional)

    x = x_ref[...]

    # fc1 + relu   (accumulate in f32, epilogue in f32)
    h = jnp.dot(x, p_ref[rw1:rw1 + c_in1, :c1],
                preferred_element_type=jnp.float32)
    h = jnp.maximum(h + p_ref[rb1:rb1 + 1, :c1], 0.0)

    # fc2 + relu
    h = jnp.dot(h.astype(wdt), p_ref[rw2:rw2 + c1, :c2],
                preferred_element_type=jnp.float32)
    h = jnp.maximum(h + p_ref[rb2:rb2 + 1, :c2], 0.0)

    # fc3 + relu
    h = jnp.dot(h.astype(wdt), p_ref[rw3:rw3 + c2, :c3],
                preferred_element_type=jnp.float32)
    h = jnp.maximum(h + p_ref[rb3:rb3 + 1, :c3], 0.0)

    # fc4: use the full c_pad (=128n) lane-padded weight/bias so the result is
    # already lane-dense; padding lanes are exact zeros (zero weight cols +
    # zero bias), and the store below is an unmasked full-lane vst.
    h = jnp.dot(h.astype(wdt), p_ref[rw4:rw4 + c3, :c_pad],
                preferred_element_type=jnp.float32)
    o_ref[...] = (h + p_ref[rb4:rb4 + 1, :c_pad]).astype(o_ref.dtype)


def pack_params(params, *, dtype=jnp.float32):
    """Pack w1..w4 / b1..b4 into one [R, c_pad] zero-padded slab.

    Returns (slab, row_offsets dict, c_pad). Every segment starts at an
    8-row-aligned offset; the lane dim is padded to a multiple of 128.
    """
    widths = [params[f"w{i}"].shape[1] for i in range(1, 5)]
    c_pad = (-(-max(widths) // 128)) * 128
    segs, row_off, row = [], {}, 0
    for name in ("w1", "b1", "w2", "b2", "w3", "b3", "w4", "b4"):
        a = jnp.asarray(params[name], dtype)
        r, c = a.shape
        r_pad = (-(-r // 8)) * 8
        segs.append(jnp.pad(a, ((0, r_pad - r), (0, c_pad - c))))
        row_off[name] = row
        row += r_pad
    return jnp.concatenate(segs, axis=0), row_off, c_pad


def _pick_tb(B):
    # Small batches: one grid step. Large batches: 512-1024 row tiles hit the
    # measured HBM-roofline sweet spot and give the pipeline/megacore something
    # to overlap/shard.
    if B <= 1024:
        return B
    for cand in (1024, 512, 256, 128):
        if B % cand == 0:
            return cand
    return B


def graph2property_forward(features, params, *, tb=None,
                           compute_dtype=jnp.float32):
    """features: [B, c_in1]; params: w1..w4 as [in, out], b1..b4 as [1, out]."""
    B, c_in1 = features.shape
    c1, c2, c3, c4 = (params[f"w{i}"].shape[1] for i in range(1, 5))
    assert params["w1"].shape[0] == c_in1

    slab, row_off, c_pad = pack_params(params, dtype=compute_dtype)
    x = features.astype(compute_dtype)

    if tb is None:
        tb = _pick_tb(B)
    assert B % tb == 0, (B, tb)
    grid = (B // tb,)

    kernel = functools.partial(
        _mlp_kernel,
        dims=(c_in1, c1, c2, c3, c4, c_pad),
        row_off=tuple(row_off[n] for n in
                      ("w1", "b1", "w2", "b2", "w3", "b3", "w4", "b4")),
    )

    out_padded = pl.pallas_call(
        kernel,
        out_shape=jax.ShapeDtypeStruct((B, c_pad), jnp.float32),
        grid_spec=pl.GridSpec(
            grid=grid,
            in_specs=[
                # Features: tiled along the batch axis only.
                pl.BlockSpec((tb, c_in1), lambda i: (i, 0)),
                # Single packed parameter slab, replicated to every grid step
                # (constant index map -> stays resident; one coalesced DMA).
                pl.BlockSpec(slab.shape, lambda i: (0, 0)),
            ],
            out_specs=pl.BlockSpec((tb, c_pad), lambda i: (i, 0)),
        ),
        compiler_params=pltpu.CompilerParams(
            dimension_semantics=("parallel",)),
    )(x, slab)

    # Drop the zero padding lanes; the in-kernel store stayed lane-dense.
    return out_padded[:, :c4]


def init_params(key, c_in1, c_out1, c_out2, c_out3, c_out4):
    """Deterministic init mimicking nn.Linear default (uniform +-1/sqrt(fan_in))."""
    dims = [(c_in1, c_out1), (c_out1, c_out2), (c_out2, c_out3), (c_out3, c_out4)]
    params = {}
    for idx, (fan_in, fan_out) in enumerate(dims, start=1):
        key, kw, kb = jax.random.split(key, 3)
        bound = 1.0 / jnp.sqrt(fan_in)
        params[f"w{idx}"] = jax.random.uniform(
            kw, (fan_in, fan_out), jnp.float32, -bound, bound)
        params[f"b{idx}"] = jax.random.uniform(
            kb, (1, fan_out), jnp.float32, -bound, bound)
    return params


def reference_forward(features, params):
    h = jnp.maximum(features @ params["w1"] + params["b1"], 0.0)
    h = jnp.maximum(h @ params["w2"] + params["b2"], 0.0)
    h = jnp.maximum(h @ params["w3"] + params["b3"], 0.0)
    return h @ params["w4"] + params["b4"]


if __name__ == "__main__":
    # Small shapes consistent with the module: features [B, c_in1]
    B = 8
    c_in1, c_out1, c_out2, c_out3, c_out4 = 32, 64, 64, 32, 16

    key = jax.random.PRNGKey(0)
    key, kx = jax.random.split(key)
    features = jax.random.normal(kx, (B, c_in1), jnp.float32)
    params = init_params(key, c_in1, c_out1, c_out2, c_out3, c_out4)

    out = graph2property_forward(features, params)
    out = jax.block_until_ready(out)

    ref = reference_forward(features, params)
    assert out.shape == (B, c_out4)
    assert jnp.allclose(out, ref, atol=1e-5, rtol=1e-5)

    print("KERNEL_OK")
</pallas_src>

<mosaic_0001>
module attributes {stable_mosaic.version = 11 : i64} {
  func.func @_mlp_kernel(%arg0: i32, %arg1: memref<8x32xf32, #tpu.memory_space<vmem>>, %arg2: memref<224x128xf32, #tpu.memory_space<vmem>>, %arg3: memref<8x128xf32, #tpu.memory_space<vmem>>) attributes {dimension_semantics = [#tpu.dimension_semantics<parallel>], iteration_bounds = array<i64: 1>, scalar_prefetch = 0 : i64, scratch_operands = 0 : i64, tpu.core_type = #tpu.core_type<tc>, window_params = [{transform_indices = @transform_0, window_bounds = array<i64: 8, 32>}, {pipeline_mode = #tpu.pipeline_mode<synchronous>, transform_indices = @transform_1, window_bounds = array<i64: 224, 128>}, {transform_indices = @transform_2, window_bounds = array<i64: 8, 128>}]} {
    %c0 = arith.constant 0 : index
    %c0_0 = arith.constant 0 : index
    %0 = vector.load %arg1[%c0, %c0_0] : memref<8x32xf32, #tpu.memory_space<vmem>>, vector<8x32xf32>
    %c0_1 = arith.constant 0 : index
    %c0_2 = arith.constant 0 : index
    %1 = vector.load %arg2[%c0_1, %c0_2] : memref<224x128xf32, #tpu.memory_space<vmem>>, vector<32x64xf32>
    %cst = arith.constant dense<0.000000e+00> : vector<8x64xf32>
    %2 = tpu.matmul %0, %1, %cst {dimension_numbers = #tpu.dot_dimension_numbers<[1], [0], [0], [1], [0, 0, 1, 1], [], []>} : vector<8x32xf32>, vector<32x64xf32>, vector<8x64xf32> -> vector<8x64xf32>
    %c32 = arith.constant 32 : index
    %c0_3 = arith.constant 0 : index
    %3 = vector.load %arg2[%c32, %c0_3] : memref<224x128xf32, #tpu.memory_space<vmem>>, vector<1x64xf32>
    %4 = vector.broadcast %3 : vector<1x64xf32> to vector<8x64xf32>
    %5 = arith.addf %2, %4 : vector<8x64xf32>
    %cst_4 = arith.constant 0.000000e+00 : f32
    %6 = vector.broadcast %cst_4 : f32 to vector<8x64xf32>
    %7 = arith.maximumf %5, %6 : vector<8x64xf32>
    %c40 = arith.constant 40 : index
    %c0_5 = arith.constant 0 : index
    %8 = vector.load %arg2[%c40, %c0_5] : memref<224x128xf32, #tpu.memory_space<vmem>>, vector<64x64xf32>
    %cst_6 = arith.constant dense<0.000000e+00> : vector<8x64xf32>
    %9 = tpu.matmul %7, %8, %cst_6 {dimension_numbers = #tpu.dot_dimension_numbers<[1], [0], [0], [1], [0, 0, 1, 1], [], []>} : vector<8x64xf32>, vector<64x64xf32>, vector<8x64xf32> -> vector<8x64xf32>
    %c104 = arith.constant 104 : index
    %c0_7 = arith.constant 0 : index
    %10 = vector.load %arg2[%c104, %c0_7] : memref<224x128xf32, #tpu.memory_space<vmem>>, vector<1x64xf32>
    %11 = vector.broadcast %10 : vector<1x64xf32> to vector<8x64xf32>
    %12 = arith.addf %9, %11 : vector<8x64xf32>
    %cst_8 = arith.constant 0.000000e+00 : f32
    %13 = vector.broadcast %cst_8 : f32 to vector<8x64xf32>
    %14 = arith.maximumf %12, %13 : vector<8x64xf32>
    %c112 = arith.constant 112 : index
    %c0_9 = arith.constant 0 : index
    %15 = vector.load %arg2[%c112, %c0_9] : memref<224x128xf32, #tpu.memory_space<vmem>>, vector<64x32xf32>
    %cst_10 = arith.constant dense<0.000000e+00> : vector<8x32xf32>
    %16 = tpu.matmul %14, %15, %cst_10 {dimension_numbers = #tpu.dot_dimension_numbers<[1], [0], [0], [1], [0, 0, 1, 1], [], []>} : vector<8x64xf32>, vector<64x32xf32>, vector<8x32xf32> -> vector<8x32xf32>
    %c176 = arith.constant 176 : index
    %c0_11 = arith.constant 0 : index
    %17 = vector.load %arg2[%c176, %c0_11] : memref<224x128xf32, #tpu.memory_space<vmem>>, vector<1x32xf32>
    %18 = vector.broadcast %17 : vector<1x32xf32> to vector<8x32xf32>
    %19 = arith.addf %16, %18 : vector<8x32xf32>
    %cst_12 = arith.constant 0.000000e+00 : f32
    %20 = vector.broadcast %cst_12 : f32 to vector<8x32xf32>
    %21 = arith.maximumf %19, %20 : vector<8x32xf32>
    %c184 = arith.constant 184 : index
    %c0_13 = arith.constant 0 : index
    %22 = vector.load %arg2[%c184, %c0_13] : memref<224x128xf32, #tpu.memory_space<vmem>>, vector<32x128xf32>
    %cst_14 = arith.constant dense<0.000000e+00> : vector<8x128xf32>
    %23 = tpu.matmul %21, %22, %cst_14 {dimension_numbers = #tpu.dot_dimension_numbers<[1], [0], [0], [1], [0, 0, 1, 1], [], []>} : vector<8x32xf32>, vector<32x128xf32>, vector<8x128xf32> -> vector<8x128xf32>
    %c216 = arith.constant 216 : index
    %c0_15 = arith.constant 0 : index
    %24 = vector.load %arg2[%c216, %c0_15] : memref<224x128xf32, #tpu.memory_space<vmem>>, vector<1x128xf32>
    %25 = vector.broadcast %24 : vector<1x128xf32> to vector<8x128xf32>
    %26 = arith.addf %23, %25 : vector<8x128xf32>
    %c0_16 = arith.constant 0 : index
    %c0_17 = arith.constant 0 : index
    %27 = vector.load %arg3[%c0_16, %c0_17] : memref<8x128xf32, #tpu.memory_space<vmem>>, vector<8x128xf32>
    tpu.vector_store %arg3[%c0_16, %c0_17], %26 {strides = array<i32>} : memref<8x128xf32, #tpu.memory_space<vmem>>, vector<8x128xf32>,
    return
  }
  func.func @transform_0(%arg0: i32) -> (i32, i32) {
    %c0_i32 = arith.constant 0 : i32
    %c0_i32_0 = arith.constant 0 : i32
    return %arg0, %c0_i32 : i32, i32
  }
  func.func @transform_1(%arg0: i32) -> (i32, i32) {
    %c0_i32 = arith.constant 0 : i32
    %c0_i32_0 = arith.constant 0 : i32
    %c0_i32_1 = arith.constant 0 : i32
    return %c0_i32, %c0_i32_0 : i32, i32
  }
  func.func @transform_2(%arg0: i32) -> (i32, i32) {
    %c0_i32 = arith.constant 0 : i32
    %c0_i32_0 = arith.constant 0 : i32
    return %arg0, %c0_i32 : i32, i32
  }
}

</mosaic_0001>

<bundles_post_ra>
// kernel: tpu_custom_call.1
= control target key start
LH: loop header
LB: loop body
LE: loop exit
PB: predicated region body
PF: predicated region fallthrough
CT: control target
= control target key end

     0   :  { %7 = vsyncpa [#allocation3], 0  ;;  %s695_s0 = inlined_call_operand.hbm [shape: f32[8,32], index: 0, kind: input, shape index: {}]   ;;  %s696_s1 = inlined_call_operand.hbm [shape: f32[224,128], index: 1, kind: input, shape index: {}]   ;;  %s697_s2 = inlined_call_operand.hbm [shape: f32[8,128], index: 2, kind: output, shape index: {}]  }
   0x1   :  { %8 = vsyncpa [#allocation6], 0 }
   0x2   :  { %9 = vsyncpa [#allocation4], 0  ;;  %s609_s9 = smov [#allocation2]   ;;  %s610_s11 = smov [#allocation5]  }
   0x3   :  { %s16_s10 = sshll.u32 %s609_s9, 4  ;;  %s25_s12 = sshll.u32 %s610_s11, 4  ;;  %s17_s10 = int_to_ptr.vmem [resolvable:$true] %s16_s10  ;;  %s632_s12 = int_to_ptr.vmem [resolvable:$true] %s25_s12 }
   0x4   :  { %s537_s15 = scalar_lea.hbm %s695_s0, 128 }
   0x5   :  { %p538_p0 = scmp.ne.s32.totalorder %s695_s0, %s537_s15  ;;  %p541_p1 = scmp.lt.u32.totalorder %s537_s15, %s695_s0 }
   0x7   :  { %p543_p2 = pnand %p541_p1, %p538_p0 }
   0x9   :  { %546 = shalt.err (!%p543_p2)
}
   0xa   :  { %s547_s20 = scalar_lea.vmem %s17_s10, 128  ;;  %p552_p4 = scmp.lt.s32.totalorder %s17_s10, %s17_s10 }
   0xb   :  { %p548_p3 = scmp.ne.s32.totalorder %s17_s10, %s547_s20  ;;  %p553_p5 = scmp.lt.s32.totalorder %s547_s20, %s547_s20 }
   0xd   :  { %p554_p6 = por %p553_p5, %p552_p4 }
   0xf   :  { %p555_p7 = pnand %p554_p6, %p548_p3 }
  0x11   :  { %558 = shalt.err (!%p555_p7)
}
  0x12   :  { %19 = dma.hbm_to_vmem [thread:$0]  %s695_s0, 128, %s17_s10, [#allocation3]  }
  0x13   :  { %s559_s25 = scalar_lea.hbm %s696_s1, 3584 }
  0x14   :  { %p560_p8 = scmp.ne.s32.totalorder %s696_s1, %s559_s25  ;;  %p563_p9 = scmp.lt.u32.totalorder %s559_s25, %s696_s1 }
  0x16   :  { %p565_p10 = pnand %p563_p9, %p560_p8 }
  0x18   :  { %568 = shalt.err (!%p565_p10)
}
  0x19   :  { %s569_s30 = scalar_lea.vmem %s632_s12, 3584  ;;  %p574_p12 = scmp.lt.s32.totalorder %s632_s12, %s632_s12 }
  0x1a   :  { %p570_p11 = scmp.ne.s32.totalorder %s632_s12, %s569_s30  ;;  %p575_p13 = scmp.lt.s32.totalorder %s569_s30, %s569_s30 }
  0x1c   :  { %p576_p0 = por %p575_p13, %p574_p12 }
  0x1e   :  { %p577_p1 = pnand %p576_p0, %p570_p11 }
  0x20   :  { %580 = shalt.err (!%p577_p1)
}
  0x21   :  { %s611_s0 = smov 128   ;;  %s612_s3 = smov 8  }
  0x22   :  { %31 = dma.hbm_to_vmem [thread:$0]  %s696_s1, 3584, %s632_s12, [#allocation6], %s611_s0, %s611_s0, %s612_s3  }
  0x23   :  { %603 = dma.done.wait [#allocation3], 128  }
  0x24   :  { %604 = vsyncadd [#allocation3], 4294967168 }
  0x25   :  { %605 = dma.done.wait [#allocation6], 3584  }
  0x26   :  { %606 = vsyncadd [#allocation6], 4294963712  ;;  %v613_v0 = vmov 0.0|0.0   ;;  %vm614_vm0 = vmmov 0   ;;  %v615_v1 = vmov 0.0   ;;  %v39_v2 = vld [vmem:[#allocation5] sm:$0xff] }
  0x27   :  { %493 = vmatprep.subr.bf16.mxu0 %v613_v0  ;;  %441 = vmatprep.mubr.msk.f32.mxu0 %vm614_vm0, %v615_v1  ;;  %v40_v3 = vld [vmem:[#allocation5 + $0x8] sm:$0xff]  ;;  %v41_v4 = vld [vmem:[#allocation5 + $0x10] sm:$0xff]  ;;  %v42_v6 = vld [vmem:[#allocation5 + $0x18] sm:$0xff]  ;;  %vm48_vm1 = vcmask 261120   ;;  %vm136_vm2 = vcmask 523264   ;;  %s616_s1 = smov [#allocation7]  }
  0x28   :  { %499 = vmatprep.subr.bf16.mxu1 %v613_v0  ;;  %460 = vmatprep.mubr.msk.f32.mxu1 %vm614_vm0, %v615_v1  ;;  %v494_v5 = vpack.c.bf16 %v40_v3, %v39_v2  ;;  %v123_v7 = vld [vmem:[#allocation5 + $0x28] sm:$0xff]  ;;  %v124_v8 = vld [vmem:[#allocation5 + $0x30] sm:$0xff]  ;;  %v125_v9 = vld [vmem:[#allocation5 + $0x38] sm:$0xff]  ;;  %v497_v11 = vpack.c.bf16 %v42_v6, %v41_v4  ;;  %s387_s6 = sshll.u32 %s616_s1, 4  ;;  %s388_s6 = int_to_ptr.vmem [resolvable:$true] %s387_s6 }
  0x29   :  { %v126_v10 = vld [vmem:[#allocation5 + $0x40] sm:$0xff]  ;;  %v500_v12 = vpack.c.bf16 %v124_v8, %v123_v7  ;;  %v127_v14 = vld [vmem:[#allocation5 + $0x48] sm:$0xff]  ;;  %v128_v15 = vld [vmem:[#allocation5 + $0x50] sm:$0xff]  ;;  %s581_s7 = scalar_lea.vmem %s388_s6, 128  ;;  %p586_p3 = scmp.lt.s32.totalorder %s388_s6, %s388_s6 }
  0x2a   :  { %495 = vmatpush3.bf16.msra.mxu0 %v494_v5  ;;  %v503_v13 = vpack.c.bf16 %v126_v10, %v125_v9  ;;  %v38_v16 = vld [vmem:[#allocation2] sm:$0xff]  ;;  %v506_v17 = vpack.c.bf16 %v128_v15, %v127_v14  ;;  %v130_v19 = vld [vmem:[#allocation5 + $0x60] sm:$0xff]  ;;  %v211_v21 = vld [vmem:[#allocation5 + $0x70] sm:$0xff]  ;;  %p582_p2 = scmp.ne.s32.totalorder %s388_s6, %s581_s7  ;;  %p587_p4 = scmp.lt.s32.totalorder %s581_s7, %s581_s7 }
  0x2b   :  { %496 = vmatprep.subr.bf16.mxu0 %v613_v0  ;;  %501 = vmatpush3.bf16.msra.mxu1 %v500_v12  ;;  %v129_v18 = vld [vmem:[#allocation5 + $0x58] sm:$0xff]  ;;  %v213_v23 = vld [vmem:[#allocation5 + $0x80] sm:$0xff]  ;;  %v214_v25 = vld [vmem:[#allocation5 + $0x88] sm:$0xff] }
  0x2c   :  { %502 = vmatprep.subr.bf16.mxu1 %v613_v0  ;;  %v509_v20 = vpack.c.bf16 %v130_v19, %v129_v18  ;;  %v212_v22 = vld [vmem:[#allocation5 + $0x78] sm:$0xff]  ;;  %v515_v26 = vpack.c.bf16 %v214_v25, %v213_v23  ;;  %v215_v27 = vld [vmem:[#allocation5 + $0x90] sm:$0xff]  ;;  %v397_v30 = vld [vmem:[#allocation5 + $0x20] ss:$0 sm:$0xff]  ;;  %p588_p5 = por %p587_p4, %p586_p3 }
  0x2d   :  { %v512_v24 = vpack.c.bf16 %v212_v22, %v211_v21  ;;  %v216_v28 = vld [vmem:[#allocation5 + $0x98] sm:$0xff]  ;;  %v217_v35 = vld [vmem:[#allocation5 + $0xa0] sm:$0xff]  ;;  %v218_v36 = vld [vmem:[#allocation5 + $0xa8] sm:$0xff] }
  0x2e   :  { %498 = vmatpush3.bf16.msra.mxu0 %v497_v11  ;;  %v518_v29 = vpack.c.bf16 %v216_v28, %v215_v27  ;;  %v521_v37 = vpack.c.bf16 %v218_v36, %v217_v35  ;;  %v298_v38 = vld [vmem:[#allocation5 + $0xb8] sm:$0xff]  ;;  %v299_v39 = vld [vmem:[#allocation5 + $0xc0] sm:$0xff]  ;;  %v399_v41 = vld [vmem:[#allocation5 + $0x68] ss:$0 sm:$0xff]  ;;  %p589_p6 = pnand %p588_p5, %p582_p2 }
  0x2f   :  { %511 = vmatprep.subr.bf16.mxu0 %v613_v0  ;;  %504 = vmatpush3.bf16.msra.mxu1 %v503_v13  ;;  %v524_v40 = vpack.c.bf16 %v299_v39, %v298_v38  ;;  %v300_v46 = vld [vmem:[#allocation5 + $0xc8] sm:$0xff]  ;;  %v301_v47 = vld [vmem:[#allocation5 + $0xd0] sm:$0xff]  ;;  %v403_v54 = vld [vmem:[#allocation5 + $0xd8] ss:$0 sm:$0xff] }
  0x30   :  { %505 = vmatprep.subr.bf16.mxu1 %v613_v0  ;;  %v527_v48 = vpack.c.bf16 %v301_v47, %v300_v46  ;;  %v401_v49 = vld [vmem:[#allocation5 + $0xb0] ss:$0 sm:$0xff] }
  0x31   :  { %442 = vmatmul.mubr.msk.f32.vlgmr.msra.gmra.mrb[0].mxu0 %vm48_vm1, %v38_v16 }
  0x32   :  { %479 = vmatprep.mubr.msk.f32.mxu0 %vm614_vm0, %v615_v1  ;;  %513 = vmatpush3.bf16.msra.mxu0 %v512_v24 }
  0x33   :  { %507 = vmatpush3.bf16.msra.mxu1 %v506_v17  ;;  %514 = vmatprep.subr.bf16.mxu0 %v613_v0 }
  0x34   :  { %508 = vmatprep.subr.bf16.mxu1 %v613_v0 }
  0x36   :  { %516 = vmatpush3.bf16.msra.mxu0 %v515_v26 }
  0x37   :  { %510 = vmatpush3.bf16.msra.mxu1 %v509_v20  ;;  %517 = vmatprep.subr.bf16.mxu0 %v613_v0 }
  0x38   :  { %523 = vmatprep.subr.bf16.mxu1 %v613_v0 }
  0x3a   :  { %519 = vmatpush3.bf16.msra.mxu0 %v518_v29 }
  0x3b   :  { %520 = vmatprep.subr.bf16.mxu0 %v613_v0 }
  0x3e   :  { %522 = vmatpush3.bf16.msra.mxu0 %v521_v37 }
 0x104   :  { %v118_v31 = vpop.f32.mrb[0].mxu0 }
 0x105   :  { %v119_v32 = vadd.f32 %v397_v30, %v118_v31  ;;  %v443_v33 = vpop.f32.mrb[1].mxu0 }
 0x107   :  { %v122_v34 = vmax.f32 %v119_v32, 0.0 }
 0x109   :  { %461 = vmatmul.mubr.msk.f32.vlgmr.msra.gmra.mrb[0].mxu1 %vm136_vm2, %v122_v34 }
 0x10a   :  { %490 = vmatprep.mubr.msk.f32.mxu1 %vm614_vm0, %v615_v1  ;;  %525 = vmatpush3.bf16.msra.mxu1 %v524_v40 }
 0x10b   :  { %526 = vmatprep.subr.bf16.mxu1 %v613_v0 }
 0x10e   :  { %528 = vmatpush3.bf16.msra.mxu1 %v527_v48 }
 0x1dc   :  { %v206_v42 = vpop.f32.mrb[0].mxu1 }
 0x1dd   :  { %v207_v43 = vadd.f32 %v399_v41, %v206_v42  ;;  %v462_v44 = vpop.f32.mrb[1].mxu1 }
 0x1df   :  { %v210_v45 = vmax.f32 %v207_v43, 0.0 }
 0x1e1   :  { %480 = vmatmul.mubr.msk.f32.vlgmr.msra.gmra.mrb[2].mxu0 %vm136_vm2, %v210_v45 }
 0x2b4   :  { %v293_v50 = vpop.f32.mrb[2].mxu0 }
 0x2b5   :  { %v294_v51 = vadd.f32 %v401_v49, %v293_v50  ;;  %v481_v52 = vpop.f32.mrb[3].mxu0 }
 0x2b7   :  { %v297_v53 = vmax.f32 %v294_v51, 0.0 }
 0x2b9   :  { %491 = vmatmul.mubr.msk.f32.vlgmr.msra.gmra.mrb[2].mxu1 %vm48_vm1, %v297_v53 }
 0x38c   :  { %v376_v55 = vpop.f32.mrb[2].mxu1 }
 0x38d   :  { %v377_v56 = vadd.f32 %v403_v54, %v376_v55  ;;  %v492_v57 = vpop.f32.mrb[3].mxu1 }
 0x38f   :  { %380 = vst [vmem:[#allocation7] sm:$0xff] %v377_v56 }
 0x390   :  { %592 = shalt.err (!%p589_p6)
}
 0x391   :  { %s593_s10 = scalar_lea.hbm %s697_s2, 128 }
 0x392   :  { %p594_p7 = scmp.ne.s32.totalorder %s697_s2, %s593_s10  ;;  %p597_p8 = scmp.lt.u32.totalorder %s593_s10, %s697_s2 }
 0x394   :  { %p599_p9 = pnand %p597_p8, %p594_p7 }
 0x396   :  { %602 = shalt.err (!%p599_p9)
}
 0x397   :  { %390 = dma.vmem_to_hbm [thread:$0]  %s388_s6, 128, %s697_s2, [#allocation4]  }
 0x398   :  { %607 = dma.done.wait [#allocation4], 128  }
 0x399   :  { %608 = vsyncadd [#allocation4], 4294967168 }
 0x39a   :  { %394 = vsyncpa [#allocation3], 1 }
 0x39b   :  { %395 = vsyncpa [#allocation6], 1 }
 0x39c   :  { %396 = vsyncpa [#allocation4], 1 }

</bundles_post_ra>
